<compile_context>
chip_gen: v7x
topology: tpu7x:2x2x1
jax: 0.10.0
libtpu: 0.0.40
codegen_flags: <defaults>
</compile_context>

<pallas_src>
import math

import jax
import jax.numpy as jnp
from jax.experimental import pallas as pl
from jax.experimental.pallas import tpu as pltpu

_LANES = 128
# 4096 rows * 128 lanes * 4 B = 2 MiB per f32 data block.  With default
# double-buffering, live VMEM is (x + out + lane-padded factor) * 2 ~= 12 MiB:
# fits v5e's 16 MiB default scoped VMEM and leaves headroom on v7x (64 MiB
# physical / 32 MiB scoped).  ~85%+ of HBM roofline at this block size.
_MAX_ROWS = 4096
# Below this total size the pallas_call launch + reshapes dominate; XLA's
# fused broadcast multiply is strictly faster.
_SMALL_BYTES = 2 * 1024 * 1024
_VMEM_LIMIT = 32 * 1024 * 1024


def _intensity_kernel(f_ref, x_ref, o_ref):
    # f_ref: (row_tile, 1) per-row factor (x.dtype); x_ref/o_ref: (row_tile, 128).
    # Single vld/vmul/vst per vreg -> kernel is purely HBM-DMA bound.
    o_ref[...] = (x_ref[...] * f_ref[...]).astype(o_ref.dtype)


def _xla_path(x, factor_f32):
    f = factor_f32.reshape((-1,) + (1,) * (x.ndim - 1))
    return (x * f).astype(x.dtype)


def intensity_aug(x, key, scale=0.1, *, force_kernel=False, donate_x=False,
                  max_rows=_MAX_ROWS):
    """Pallas equivalent of IntensityAug(scale).forward(x).  x: (B, C, H, W)."""
    orig_shape = x.shape
    B = x.shape[0]
    N = math.prod(x.shape[1:])
    itemsize = jnp.dtype(x.dtype).itemsize

    # Per-sample scalar factor: O(B) wrapper work.  Clamp/affine math in f32,
    # cast to x.dtype at the end so bf16 inputs multiply natively on the VPU.
    noise = jax.random.normal(key, (B,), dtype=jnp.float32)
    factor_f32 = 1.0 + jnp.float32(scale) * jnp.clip(noise, -2.0, 2.0)

    # Tiny tensors: let XLA fuse the broadcast multiply.
    if B * N * itemsize < _SMALL_BYTES and not force_kernel:
        return _xla_path(x, factor_f32)

    if N % _LANES != 0:
        # TODO(synk): handle the ragged lane tail with a masked pltpu.store on
        # the last block instead of falling back; the fallback avoids the
        # full-tensor pad + unpad HBM copies of the previous version.
        return _xla_path(x, factor_f32)

    # Lane-dense, batch-decoupled view: (B*R, 128).  Blocking over the fused
    # row axis keeps blocks multi-MiB regardless of per-sample size.
    R = N // _LANES
    total_rows = B * R
    x2 = x.reshape(total_rows, _LANES)

    # Per-row factor sidecar (1/128 of the x HBM traffic).
    row_factor = jnp.repeat(factor_f32, R).astype(x.dtype).reshape(total_rows, 1)

    if total_rows <= max_rows:
        row_tile = total_rows              # full extent: always a legal block
    else:
        row_tile = max_rows                # multiple of 8 -> (8,128) tiling ok
    num_blocks = pl.cdiv(total_rows, row_tile)

    kwargs = {}
    if donate_x:
        # x2 is operand index 1 (after the factor sidecar); output index 0.
        kwargs["input_output_aliases"] = {1: 0}

    out2 = pl.pallas_call(
        _intensity_kernel,
        out_shape=jax.ShapeDtypeStruct((total_rows, _LANES), x.dtype),
        grid_spec=pltpu.PrefetchScalarGridSpec(
            num_scalar_prefetch=0,
            grid=(num_blocks,),
            in_specs=[
                pl.BlockSpec((row_tile, 1), lambda r: (r, 0)),
                pl.BlockSpec((row_tile, _LANES), lambda r: (r, 0)),
            ],
            out_specs=pl.BlockSpec((row_tile, _LANES), lambda r: (r, 0)),
        ),
        compiler_params=pltpu.CompilerParams(
            dimension_semantics=("parallel",),
            vmem_limit_bytes=_VMEM_LIMIT,
        ),
        cost_estimate=pl.CostEstimate(
            flops=total_rows * _LANES,
            transcendentals=0,
            bytes_accessed=(2 * total_rows * _LANES + total_rows) * itemsize,
        ),
        **kwargs,
    )(row_factor, x2)

    return out2.reshape(orig_shape)


if __name__ == "__main__":
    root = jax.random.PRNGKey(0)
    k_x, k_noise, k_x2 = jax.random.split(root, 3)

    # Primary demo: small shape consistent with the module; force the kernel
    # path (real use would take the XLA short-circuit at this size).
    B, C, H, W = 2, 4, 16, 16
    x = jax.random.normal(k_x, (B, C, H, W), dtype=jnp.float32)
    out = jax.block_until_ready(
        intensity_aug(x, k_noise, scale=0.1, force_kernel=True))

    noise = jax.random.normal(k_noise, (B,), dtype=jnp.float32)
    ref = x * (1.0 + 0.1 * jnp.clip(noise, -2.0, 2.0))[:, None, None, None]
    assert out.shape == x.shape and out.dtype == x.dtype
    assert jnp.allclose(out, ref, atol=1e-6, rtol=1e-6)

    # Second check: multi-block grid with a partial last block (max_rows
    # override keeps the shape small while exercising boundary masking).
    B2, C2, H2, W2 = 3, 4, 16, 16          # total_rows = 24, row_tile = 16
    x2 = jax.random.normal(k_x2, (B2, C2, H2, W2), dtype=jnp.float32)
    out2 = jax.block_until_ready(
        intensity_aug(x2, k_noise, scale=0.1, force_kernel=True, max_rows=16))
    noise2 = jax.random.normal(k_noise, (B2,), dtype=jnp.float32)
    ref2 = x2 * (1.0 + 0.1 * jnp.clip(noise2, -2.0, 2.0))[:, None, None, None]
    assert out2.shape == x2.shape and out2.dtype == x2.dtype
    assert jnp.allclose(out2, ref2, atol=1e-6, rtol=1e-6)

    print("KERNEL_OK")
</pallas_src>

<mosaic_0001>
module attributes {stable_mosaic.version = 11 : i64} {
  func.func @_intensity_kernel(%arg0: i32, %arg1: memref<16x1xf32, #tpu.memory_space<vmem>>, %arg2: memref<16x128xf32, #tpu.memory_space<vmem>>, %arg3: memref<16x128xf32, #tpu.memory_space<vmem>>) attributes {dimension_semantics = [#tpu.dimension_semantics<parallel>], iteration_bounds = array<i64: 1>, scalar_prefetch = 0 : i64, scratch_operands = 0 : i64, tpu.core_type = #tpu.core_type<tc>, window_params = [{transform_indices = @transform_0, window_bounds = array<i64: 16, 1>}, {transform_indices = @transform_1, window_bounds = array<i64: 16, 128>}, {transform_indices = @transform_2, window_bounds = array<i64: 16, 128>}]} {
    %c0 = arith.constant 0 : index
    %c0_0 = arith.constant 0 : index
    %0 = vector.load %arg2[%c0, %c0_0] : memref<16x128xf32, #tpu.memory_space<vmem>>, vector<16x128xf32>
    %c0_1 = arith.constant 0 : index
    %c0_2 = arith.constant 0 : index
    %1 = vector.load %arg1[%c0_1, %c0_2] : memref<16x1xf32, #tpu.memory_space<vmem>>, vector<16x1xf32>
    %2 = vector.broadcast %1 : vector<16x1xf32> to vector<16x128xf32>
    %3 = arith.mulf %0, %2 : vector<16x128xf32>
    %c0_3 = arith.constant 0 : index
    %c0_4 = arith.constant 0 : index
    %4 = vector.load %arg3[%c0_3, %c0_4] : memref<16x128xf32, #tpu.memory_space<vmem>>, vector<16x128xf32>
    tpu.vector_store %arg3[%c0_3, %c0_4], %3 {strides = array<i32>} : memref<16x128xf32, #tpu.memory_space<vmem>>, vector<16x128xf32>,
    return
  }
  func.func @transform_0(%arg0: i32) -> (i32, i32) {
    %c0_i32 = arith.constant 0 : i32
    %c0_i32_0 = arith.constant 0 : i32
    return %arg0, %c0_i32 : i32, i32
  }
  func.func @transform_1(%arg0: i32) -> (i32, i32) {
    %c0_i32 = arith.constant 0 : i32
    %c0_i32_0 = arith.constant 0 : i32
    return %arg0, %c0_i32 : i32, i32
  }
  func.func @transform_2(%arg0: i32) -> (i32, i32) {
    %c0_i32 = arith.constant 0 : i32
    %c0_i32_0 = arith.constant 0 : i32
    return %arg0, %c0_i32 : i32, i32
  }
}

</mosaic_0001>

<bundles_post_ra>
// kernel: tpu_custom_call.1
= control target key start
LH: loop header
LB: loop body
LE: loop exit
PB: predicated region body
PF: predicated region fallthrough
CT: control target
= control target key end

     0   :  { %s118_s0 = inlined_call_operand.vmem [shape: f32[16,1], index: 0, kind: input, shape index: {}]   ;;  %s119_s1 = inlined_call_operand.vmem [shape: f32[16,128], index: 1, kind: input, shape index: {}]   ;;  %s120_s2 = inlined_call_operand.hbm [shape: f32[16,128], index: 2, kind: output, shape index: {}]  }
   0x1   :  { %v14_v0 = vld [vmem:[%s118_s0] sm:$0xff] }
   0x2   :  { %7 = vsyncpa [#allocation3], 0  ;;  %v75_v1 = vmov 0   ;;  %v15_v2 = vld [vmem:[%s118_s0 + $0x8] sm:$0xff]  ;;  %v12_v3 = vld [vmem:[%s119_s1] sm:$0xff]  ;;  %s76_s15 = smov [#allocation2]  }
   0x3   :  { %50 = vset.pattern.permute.xlu0 %v75_v1  ;;  %s35_s16 = sshll.u32 %s76_s15, 4  ;;  %v13_v6 = vld [vmem:[%s119_s1 + $0x8] sm:$0xff]  ;;  %s36_s16 = int_to_ptr.vmem [resolvable:$true] %s35_s16 }
   0x4   :  { %18 = vperm.xlu0 %50, %v14_v0   ;;  %s51_s19 = scalar_lea.vmem %s36_s16, 256  ;;  %p56_p1 = scmp.lt.s32.totalorder %s36_s16, %s36_s16 }
   0x5   :  { %p52_p0 = scmp.ne.s32.totalorder %s36_s16, %s51_s19  ;;  %p57_p2 = scmp.lt.s32.totalorder %s51_s19, %s51_s19 }
   0x7   :  { %p58_p3 = por %p57_p2, %p56_p1 }
   0x8   :  { %23 = vperm.xlu0 %50, %v15_v2  }
   0x9   :  { %p59_p4 = pnand %p58_p3, %p52_p0 }
  0x83   :  { %v19_v4 = vpop.permute.xlu0 %18 }
  0x84   :  { %v26_v5 = vmul.f32 %v19_v4, %v12_v3 }
  0x86   :  { %28 = vst [vmem:[#allocation2] sm:$0xff] %v26_v5 }
  0x87   :  { %v24_v7 = vpop.permute.xlu0 %23 }
  0x88   :  { %v27_v8 = vmul.f32 %v24_v7, %v13_v6 }
  0x8a   :  { %29 = vst [vmem:[#allocation2 + $0x8] sm:$0xff] %v27_v8 }
  0x8b   :  { %62 = shalt.err (!%p59_p4)
}
  0x8c   :  { %s63_s21 = scalar_lea.hbm %s120_s2, 256 }
  0x8d   :  { %p64_p5 = scmp.ne.s32.totalorder %s120_s2, %s63_s21  ;;  %p67_p6 = scmp.lt.u32.totalorder %s63_s21, %s120_s2 }
  0x8f   :  { %p69_p7 = pnand %p67_p6, %p64_p5 }
  0x91   :  { %72 = shalt.err (!%p69_p7)
}
  0x92   :  { %s77_s25 = smov 128   ;;  %s78_s26 = smov 8  }
  0x93   :  { %41 = dma.vmem_to_hbm [thread:$0]  %s36_s16, 256, %s120_s2, [#allocation3], %s77_s25, %s77_s25, %s78_s26  }
  0x94   :  { %73 = dma.done.wait [#allocation3], 256  }
  0x95   :  { %74 = vsyncadd [#allocation3], 4294967040 }
  0x96   :  { %45 = vsyncpa [#allocation3], 1 }

</bundles_post_ra>
